<compile_context>
chip_gen: v7x
topology: tpu7x:2x2x1
jax: 0.10.0
libtpu: 0.0.40
codegen_flags: <defaults>
</compile_context>

<pallas_src>
import jax
import jax.numpy as jnp
from jax.experimental import pallas as pl
from jax.experimental.pallas import tpu as pltpu


# ---------------------------------------------------------------------------
# Fused kernel: GNN -> encoder -> dim-averaging -> omics scaling -> predictor
# ---------------------------------------------------------------------------
def fused_forward_kernel(
    # GNN + encoder inputs (feature-major layout: weights transposed, biases as columns)
    xT_ref, adj_ref,
    gw1T_ref, gb1c_ref, gw2T_ref, gb2c_ref,
    ew1T_ref, eb1c_ref, ew2T_ref, eb2c_ref,
    ew3c_ref, eb3m_ref,
    # predictor inputs (sample-major)
    omics_ref,
    w1_ref, g1_ref, bt1_ref,
    w2_ref, g2_ref, bt2_ref,
    w3_ref, b3_ref,
    # outputs
    pred_ref, scaled_ref,
):
    f32 = jnp.float32
    a = adj_ref[...]  # symmetric-normalized adjacency (A == A.T)

    # ---- GNN: 2-layer dense GCN (final_layer='none'), feature-major so the ----
    # ---- per-node scale comes out lane-dense as (1, N) with no transposes  ----
    # layer 1:  W1^T @ (X^T @ A) + b1  ==  (A @ X @ W1 + b1)^T    -> [gnn_hid, N]
    h = jnp.dot(xT_ref[...], a, preferred_element_type=f32)
    h = jnp.dot(gw1T_ref[...], h, preferred_element_type=f32) + gb1c_ref[...]
    h = jnp.maximum(h, 0.0)
    # layer 2 (no activation):  W2^T @ (H1 @ A) + b2
    h = jnp.dot(h, a, preferred_element_type=f32)
    h = jnp.dot(gw2T_ref[...], h, preferred_element_type=f32) + gb2c_ref[...]

    # ---- Autoencoder.encoder (Linear->ReLU->Linear->ReLU->Linear), feature-major ----
    e = jnp.maximum(jnp.dot(ew1T_ref[...], h, preferred_element_type=f32) + eb1c_ref[...], 0.0)
    e = jnp.maximum(jnp.dot(ew2T_ref[...], e, preferred_element_type=f32) + eb2c_ref[...], 0.0)
    # Final encoder layer folded with DimensionAveraging (both linear):
    #   scale[n] = mean_d(e2[n,:] @ ew3[:,d] + eb3[d]) = e2[n,:] @ mean(ew3,axis=1) + mean(eb3)
    # ew3c is the folded [4,1] column; broadcast-multiply + sublane-sum (no extra matmul,
    # no cross-lane row reduction).  Result is the lane-dense (1, N) scale row.
    scale_row = jnp.sum(e * ew3c_ref[...], axis=0, keepdims=True) + eb3m_ref[...]

    # ---- torch.mul(omics, avg.expand(F, B).t())  ==  omics * scale_row ----
    x = omics_ref[...] * scale_row               # (B, N) * (1, N)
    scaled_ref[...] = x

    # ---- DownstreamTaskNN: fc1->BN1->ReLU->fc2->BN2->ReLU->fc3->softmax ----
    # BatchNorm1d in training mode: batch statistics, biased variance, eps=1e-5.
    # fc1/fc2 biases are omitted: a constant per-column bias cancels in (h - mean).
    eps = 1e-5

    h = jnp.dot(x, w1_ref[...], preferred_element_type=f32)
    mu = jnp.mean(h, axis=0, keepdims=True)
    var = jnp.mean((h - mu) * (h - mu), axis=0, keepdims=True)
    h = (h - mu) * jax.lax.rsqrt(var + eps) * g1_ref[...] + bt1_ref[...]
    h = jnp.maximum(h, 0.0)

    h = jnp.dot(h, w2_ref[...], preferred_element_type=f32)
    mu = jnp.mean(h, axis=0, keepdims=True)
    var = jnp.mean((h - mu) * (h - mu), axis=0, keepdims=True)
    h = (h - mu) * jax.lax.rsqrt(var + eps) * g2_ref[...] + bt2_ref[...]
    h = jnp.maximum(h, 0.0)

    logits = jnp.dot(h, w3_ref[...], preferred_element_type=f32) + b3_ref[...]
    m = jnp.max(logits, axis=1, keepdims=True)
    ez = jnp.exp(logits - m)
    denom = jnp.sum(ez, axis=1, keepdims=True)
    pred_ref[...] = ez * pl.reciprocal(denom, approx=True)


# ---------------------------------------------------------------------------
# Wrapper: one fused pallas_call, whole arrays resident in VMEM (no grid).
# ---------------------------------------------------------------------------
def neural_network_forward(omics, node_feats, adj_norm, kparams):
    B, N = omics.shape
    out_dim = kparams["w3"].shape[1]

    # Tiny one-off re-layout of the node features (input side, negligible).
    xT = jnp.transpose(node_feats)               # [gnn_in, N]

    ins = (
        xT, adj_norm,
        kparams["gw1T"], kparams["gb1c"], kparams["gw2T"], kparams["gb2c"],
        kparams["ew1T"], kparams["eb1c"], kparams["ew2T"], kparams["eb2c"],
        kparams["ew3c"], kparams["eb3m"],
        omics,
        kparams["w1"], kparams["g1"], kparams["bt1"],
        kparams["w2"], kparams["g2"], kparams["bt2"],
        kparams["w3"], kparams["b3"],
    )
    # NOTE: at realistic omics sizes this would need a tiled grid (adjacency blocked,
    # "parallel" sample axis for v7x's 2 TCs); at these shapes everything fits in VMEM.
    pred, scaled = pl.pallas_call(
        fused_forward_kernel,
        out_shape=(jax.ShapeDtypeStruct((B, out_dim), jnp.float32),
                   jax.ShapeDtypeStruct((B, N), jnp.float32)),
        in_specs=[pl.BlockSpec(memory_space=pltpu.MemorySpace.VMEM) for _ in ins],
        out_specs=(pl.BlockSpec(memory_space=pltpu.MemorySpace.VMEM),
                   pl.BlockSpec(memory_space=pltpu.MemorySpace.VMEM)),
    )(*ins)
    return pred, scaled


# ---------------------------------------------------------------------------
# Parameter construction (torch-convention layout) and kernel re-layout/folding
# ---------------------------------------------------------------------------
def make_params(key, gnn_in, gnn_hid, ae_dim, nn_in, h1, h2, out):
    ks = jax.random.split(key, 8)

    def lin(k, din, dout):
        kw, kb = jax.random.split(k)
        w = jax.random.normal(kw, (din, dout), jnp.float32) * 0.1
        b = jax.random.normal(kb, (1, dout), jnp.float32) * 0.1
        return w, b

    p = {}
    p["gw1"], p["gb1"] = lin(ks[0], gnn_in, gnn_hid)
    p["gw2"], p["gb2"] = lin(ks[1], gnn_hid, gnn_hid)
    p["ew1"], p["eb1"] = lin(ks[2], gnn_hid, 8)
    p["ew2"], p["eb2"] = lin(ks[3], 8, 4)
    p["ew3"], p["eb3"] = lin(ks[4], 4, ae_dim)
    p["w1"], p["b1"] = lin(ks[5], nn_in, h1)   # b1/b2 exist in the torch module but
    p["w2"], p["b2"] = lin(ks[6], h1, h2)      # cancel under BatchNorm -> not passed to kernel
    p["w3"], p["b3"] = lin(ks[7], h2, out)
    # BatchNorm affine params (torch init: gamma=1, beta=0)
    p["g1"] = jnp.ones((1, h1), jnp.float32)
    p["bt1"] = jnp.zeros((1, h1), jnp.float32)
    p["g2"] = jnp.ones((1, h2), jnp.float32)
    p["bt2"] = jnp.zeros((1, h2), jnp.float32)
    return p


def prepare_kernel_params(p):
    """One-off re-layout / algebraic folding for the fused kernel (outside hot path)."""
    kp = {}
    # GNN + encoder run feature-major: transposed weights, biases as column vectors.
    kp["gw1T"] = p["gw1"].T
    kp["gb1c"] = p["gb1"].T
    kp["gw2T"] = p["gw2"].T
    kp["gb2c"] = p["gb2"].T
    kp["ew1T"] = p["ew1"].T
    kp["eb1c"] = p["eb1"].T
    kp["ew2T"] = p["ew2"].T
    kp["eb2c"] = p["eb2"].T
    # Fold last encoder Linear into the DimensionAveraging mean (both linear).
    kp["ew3c"] = jnp.mean(p["ew3"], axis=1, keepdims=True)      # [4, 1]
    kp["eb3m"] = jnp.mean(p["eb3"]).reshape(1, 1)               # [1, 1]
    # Predictor weights (sample-major); fc1/fc2 biases intentionally not forwarded.
    for k in ("w1", "g1", "bt1", "w2", "g2", "bt2", "w3", "b3"):
        kp[k] = p[k]
    return kp


if __name__ == "__main__":
    # Small, consistent shapes
    N = 16          # num network nodes == num omics features (nn_input_dim)
    gnn_in = 8      # gnn_input_dim (node feature dim)
    gnn_hid = 16    # gnn_hidden_dim
    ae_dim = 4      # ae_encoding_dim
    B = 8           # num omics samples
    h1, h2, out = 32, 16, 4   # nn_hidden_dim1, nn_hidden_dim2, nn_output_dim

    key = jax.random.PRNGKey(0)
    k_feat, k_adj, k_omics, k_par = jax.random.split(key, 4)

    node_feats = jax.random.normal(k_feat, (N, gnn_in), jnp.float32)
    omics = jax.random.normal(k_omics, (B, N), jnp.float32)

    # Symmetric-normalized adjacency with self loops (GCN style)
    a_rand = (jax.random.uniform(k_adj, (N, N)) < 0.3).astype(jnp.float32)
    a_sym = jnp.minimum(jnp.maximum(a_rand, a_rand.T) + jnp.eye(N, dtype=jnp.float32), 1.0)
    deg = jnp.sum(a_sym, axis=1)
    d_inv_sqrt = 1.0 / jnp.sqrt(deg)
    adj_norm = a_sym * d_inv_sqrt[:, None] * d_inv_sqrt[None, :]

    params = make_params(k_par, gnn_in, gnn_hid, ae_dim, N, h1, h2, out)
    kparams = prepare_kernel_params(params)

    pred, scaled = neural_network_forward(omics, node_feats, adj_norm, kparams)
    jax.block_until_ready((pred, scaled))

    assert pred.shape == (B, out) and scaled.shape == (B, N)
    assert bool(jnp.all(jnp.isfinite(pred))) and bool(jnp.all(jnp.isfinite(scaled)))
    # softmax rows sum to 1 (loose tol: denominator uses EUP approximate reciprocal)
    assert bool(jnp.allclose(jnp.sum(pred, axis=1), 1.0, atol=2e-3))
    print("KERNEL_OK")
</pallas_src>

<mosaic_0001>
module attributes {stable_mosaic.version = 11 : i64} {
  func.func @fused_forward_kernel(%arg0: memref<8x16xf32, #tpu.memory_space<vmem>>, %arg1: memref<16x16xf32, #tpu.memory_space<vmem>>, %arg2: memref<16x8xf32, #tpu.memory_space<vmem>>, %arg3: memref<16x1xf32, #tpu.memory_space<vmem>>, %arg4: memref<16x16xf32, #tpu.memory_space<vmem>>, %arg5: memref<16x1xf32, #tpu.memory_space<vmem>>, %arg6: memref<8x16xf32, #tpu.memory_space<vmem>>, %arg7: memref<8x1xf32, #tpu.memory_space<vmem>>, %arg8: memref<4x8xf32, #tpu.memory_space<vmem>>, %arg9: memref<4x1xf32, #tpu.memory_space<vmem>>, %arg10: memref<4x1xf32, #tpu.memory_space<vmem>>, %arg11: memref<1x1xf32, #tpu.memory_space<vmem>>, %arg12: memref<8x16xf32, #tpu.memory_space<vmem>>, %arg13: memref<16x32xf32, #tpu.memory_space<vmem>>, %arg14: memref<1x32xf32, #tpu.memory_space<vmem>>, %arg15: memref<1x32xf32, #tpu.memory_space<vmem>>, %arg16: memref<32x16xf32, #tpu.memory_space<vmem>>, %arg17: memref<1x16xf32, #tpu.memory_space<vmem>>, %arg18: memref<1x16xf32, #tpu.memory_space<vmem>>, %arg19: memref<16x4xf32, #tpu.memory_space<vmem>>, %arg20: memref<1x4xf32, #tpu.memory_space<vmem>>, %arg21: memref<8x4xf32, #tpu.memory_space<vmem>>, %arg22: memref<8x16xf32, #tpu.memory_space<vmem>>) attributes {dimension_semantics = [], scalar_prefetch = 0 : i64, scratch_operands = 0 : i64, tpu.core_type = #tpu.core_type<tc>} {
    %c0 = arith.constant 0 : index
    %c0_0 = arith.constant 0 : index
    %0 = vector.load %arg1[%c0, %c0_0] : memref<16x16xf32, #tpu.memory_space<vmem>>, vector<16x16xf32>
    %c0_1 = arith.constant 0 : index
    %c0_2 = arith.constant 0 : index
    %1 = vector.load %arg0[%c0_1, %c0_2] : memref<8x16xf32, #tpu.memory_space<vmem>>, vector<8x16xf32>
    %cst = arith.constant dense<0.000000e+00> : vector<8x16xf32>
    %2 = tpu.matmul %1, %0, %cst {dimension_numbers = #tpu.dot_dimension_numbers<[1], [0], [0], [1], [0, 0, 1, 1], [], []>} : vector<8x16xf32>, vector<16x16xf32>, vector<8x16xf32> -> vector<8x16xf32>
    %c0_3 = arith.constant 0 : index
    %c0_4 = arith.constant 0 : index
    %3 = vector.load %arg2[%c0_3, %c0_4] : memref<16x8xf32, #tpu.memory_space<vmem>>, vector<16x8xf32>
    %cst_5 = arith.constant dense<0.000000e+00> : vector<16x16xf32>
    %4 = tpu.matmul %3, %2, %cst_5 {dimension_numbers = #tpu.dot_dimension_numbers<[1], [0], [0], [1], [0, 0, 1, 1], [], []>} : vector<16x8xf32>, vector<8x16xf32>, vector<16x16xf32> -> vector<16x16xf32>
    %c0_6 = arith.constant 0 : index
    %c0_7 = arith.constant 0 : index
    %5 = vector.load %arg3[%c0_6, %c0_7] : memref<16x1xf32, #tpu.memory_space<vmem>>, vector<16x1xf32>
    %6 = vector.broadcast %5 : vector<16x1xf32> to vector<16x16xf32>
    %7 = arith.addf %4, %6 : vector<16x16xf32>
    %cst_8 = arith.constant 0.000000e+00 : f32
    %8 = vector.broadcast %cst_8 : f32 to vector<16x16xf32>
    %9 = arith.maximumf %7, %8 : vector<16x16xf32>
    %cst_9 = arith.constant dense<0.000000e+00> : vector<16x16xf32>
    %10 = tpu.matmul %9, %0, %cst_9 {dimension_numbers = #tpu.dot_dimension_numbers<[1], [0], [0], [1], [0, 0, 1, 1], [], []>} : vector<16x16xf32>, vector<16x16xf32>, vector<16x16xf32> -> vector<16x16xf32>
    %c0_10 = arith.constant 0 : index
    %c0_11 = arith.constant 0 : index
    %11 = vector.load %arg4[%c0_10, %c0_11] : memref<16x16xf32, #tpu.memory_space<vmem>>, vector<16x16xf32>
    %cst_12 = arith.constant dense<0.000000e+00> : vector<16x16xf32>
    %12 = tpu.matmul %11, %10, %cst_12 {dimension_numbers = #tpu.dot_dimension_numbers<[1], [0], [0], [1], [0, 0, 1, 1], [], []>} : vector<16x16xf32>, vector<16x16xf32>, vector<16x16xf32> -> vector<16x16xf32>
    %c0_13 = arith.constant 0 : index
    %c0_14 = arith.constant 0 : index
    %13 = vector.load %arg5[%c0_13, %c0_14] : memref<16x1xf32, #tpu.memory_space<vmem>>, vector<16x1xf32>
    %14 = vector.broadcast %13 : vector<16x1xf32> to vector<16x16xf32>
    %15 = arith.addf %12, %14 : vector<16x16xf32>
    %c0_15 = arith.constant 0 : index
    %c0_16 = arith.constant 0 : index
    %16 = vector.load %arg6[%c0_15, %c0_16] : memref<8x16xf32, #tpu.memory_space<vmem>>, vector<8x16xf32>
    %cst_17 = arith.constant dense<0.000000e+00> : vector<8x16xf32>
    %17 = tpu.matmul %16, %15, %cst_17 {dimension_numbers = #tpu.dot_dimension_numbers<[1], [0], [0], [1], [0, 0, 1, 1], [], []>} : vector<8x16xf32>, vector<16x16xf32>, vector<8x16xf32> -> vector<8x16xf32>
    %c0_18 = arith.constant 0 : index
    %c0_19 = arith.constant 0 : index
    %18 = vector.load %arg7[%c0_18, %c0_19] : memref<8x1xf32, #tpu.memory_space<vmem>>, vector<8x1xf32>
    %19 = vector.broadcast %18 : vector<8x1xf32> to vector<8x16xf32>
    %20 = arith.addf %17, %19 : vector<8x16xf32>
    %cst_20 = arith.constant 0.000000e+00 : f32
    %21 = vector.broadcast %cst_20 : f32 to vector<8x16xf32>
    %22 = arith.maximumf %20, %21 : vector<8x16xf32>
    %c0_21 = arith.constant 0 : index
    %c0_22 = arith.constant 0 : index
    %23 = vector.load %arg8[%c0_21, %c0_22] : memref<4x8xf32, #tpu.memory_space<vmem>>, vector<4x8xf32>
    %cst_23 = arith.constant dense<0.000000e+00> : vector<4x16xf32>
    %24 = tpu.matmul %23, %22, %cst_23 {dimension_numbers = #tpu.dot_dimension_numbers<[1], [0], [0], [1], [0, 0, 1, 1], [], []>} : vector<4x8xf32>, vector<8x16xf32>, vector<4x16xf32> -> vector<4x16xf32>
    %c0_24 = arith.constant 0 : index
    %c0_25 = arith.constant 0 : index
    %25 = vector.load %arg9[%c0_24, %c0_25] : memref<4x1xf32, #tpu.memory_space<vmem>>, vector<4x1xf32>
    %26 = vector.broadcast %25 : vector<4x1xf32> to vector<4x16xf32>
    %27 = arith.addf %24, %26 : vector<4x16xf32>
    %cst_26 = arith.constant 0.000000e+00 : f32
    %28 = vector.broadcast %cst_26 : f32 to vector<4x16xf32>
    %29 = arith.maximumf %27, %28 : vector<4x16xf32>
    %c0_27 = arith.constant 0 : index
    %c0_28 = arith.constant 0 : index
    %30 = vector.load %arg10[%c0_27, %c0_28] : memref<4x1xf32, #tpu.memory_space<vmem>>, vector<4x1xf32>
    %31 = vector.broadcast %30 : vector<4x1xf32> to vector<4x16xf32>
    %32 = arith.mulf %29, %31 : vector<4x16xf32>
    %cst_29 = arith.constant dense<0.000000e+00> : vector<16xf32>
    %33 = vector.multi_reduction <add>, %32, %cst_29 [0] : vector<4x16xf32> to vector<16xf32>
    %34 = vector.shape_cast %33 : vector<16xf32> to vector<1x16xf32>
    %c0_30 = arith.constant 0 : index
    %c0_31 = arith.constant 0 : index
    %35 = vector.load %arg11[%c0_30, %c0_31] : memref<1x1xf32, #tpu.memory_space<vmem>>, vector<1x1xf32>
    %36 = vector.broadcast %35 : vector<1x1xf32> to vector<1x16xf32>
    %37 = arith.addf %34, %36 : vector<1x16xf32>
    %c0_32 = arith.constant 0 : index
    %c0_33 = arith.constant 0 : index
    %38 = vector.load %arg12[%c0_32, %c0_33] : memref<8x16xf32, #tpu.memory_space<vmem>>, vector<8x16xf32>
    %39 = vector.broadcast %37 : vector<1x16xf32> to vector<8x16xf32>
    %40 = arith.mulf %38, %39 : vector<8x16xf32>
    %c0_34 = arith.constant 0 : index
    %c0_35 = arith.constant 0 : index
    %41 = vector.load %arg22[%c0_34, %c0_35] : memref<8x16xf32, #tpu.memory_space<vmem>>, vector<8x16xf32>
    tpu.vector_store %arg22[%c0_34, %c0_35], %40 {strides = array<i32>} : memref<8x16xf32, #tpu.memory_space<vmem>>, vector<8x16xf32>,
    %c0_36 = arith.constant 0 : index
    %c0_37 = arith.constant 0 : index
    %42 = vector.load %arg13[%c0_36, %c0_37] : memref<16x32xf32, #tpu.memory_space<vmem>>, vector<16x32xf32>
    %cst_38 = arith.constant dense<0.000000e+00> : vector<8x32xf32>
    %43 = tpu.matmul %40, %42, %cst_38 {dimension_numbers = #tpu.dot_dimension_numbers<[1], [0], [0], [1], [0, 0, 1, 1], [], []>} : vector<8x16xf32>, vector<16x32xf32>, vector<8x32xf32> -> vector<8x32xf32>
    %cst_39 = arith.constant dense<0.000000e+00> : vector<32xf32>
    %44 = vector.multi_reduction <add>, %43, %cst_39 [0] : vector<8x32xf32> to vector<32xf32>
    %45 = vector.shape_cast %44 : vector<32xf32> to vector<1x32xf32>
    %cst_40 = arith.constant 8.000000e+00 : f32
    %46 = vector.broadcast %cst_40 : f32 to vector<1x32xf32>
    %47 = arith.divf %45, %46 : vector<1x32xf32>
    %48 = vector.broadcast %47 : vector<1x32xf32> to vector<8x32xf32>
    %49 = arith.subf %43, %48 : vector<8x32xf32>
    %50 = vector.broadcast %47 : vector<1x32xf32> to vector<8x32xf32>
    %51 = arith.subf %43, %50 : vector<8x32xf32>
    %52 = arith.mulf %49, %51 : vector<8x32xf32>
    %cst_41 = arith.constant dense<0.000000e+00> : vector<32xf32>
    %53 = vector.multi_reduction <add>, %52, %cst_41 [0] : vector<8x32xf32> to vector<32xf32>
    %54 = vector.shape_cast %53 : vector<32xf32> to vector<1x32xf32>
    %cst_42 = arith.constant 8.000000e+00 : f32
    %55 = vector.broadcast %cst_42 : f32 to vector<1x32xf32>
    %56 = arith.divf %54, %55 : vector<1x32xf32>
    %57 = vector.broadcast %47 : vector<1x32xf32> to vector<8x32xf32>
    %58 = arith.subf %43, %57 : vector<8x32xf32>
    %cst_43 = arith.constant 9.99999974E-6 : f32
    %59 = vector.broadcast %cst_43 : f32 to vector<1x32xf32>
    %60 = arith.addf %56, %59 : vector<1x32xf32>
    %61 = math.rsqrt %60 : vector<1x32xf32>
    %62 = vector.broadcast %61 : vector<1x32xf32> to vector<8x32xf32>
    %63 = arith.mulf %58, %62 : vector<8x32xf32>
    %c0_44 = arith.constant 0 : index
    %c0_45 = arith.constant 0 : index
    %64 = vector.load %arg14[%c0_44, %c0_45] : memref<1x32xf32, #tpu.memory_space<vmem>>, vector<1x32xf32>
    %65 = vector.broadcast %64 : vector<1x32xf32> to vector<8x32xf32>
    %66 = arith.mulf %63, %65 : vector<8x32xf32>
    %c0_46 = arith.constant 0 : index
    %c0_47 = arith.constant 0 : index
    %67 = vector.load %arg15[%c0_46, %c0_47] : memref<1x32xf32, #tpu.memory_space<vmem>>, vector<1x32xf32>
    %68 = vector.broadcast %67 : vector<1x32xf32> to vector<8x32xf32>
    %69 = arith.addf %66, %68 : vector<8x32xf32>
    %cst_48 = arith.constant 0.000000e+00 : f32
    %70 = vector.broadcast %cst_48 : f32 to vector<8x32xf32>
    %71 = arith.maximumf %69, %70 : vector<8x32xf32>
    %c0_49 = arith.constant 0 : index
    %c0_50 = arith.constant 0 : index
    %72 = vector.load %arg16[%c0_49, %c0_50] : memref<32x16xf32, #tpu.memory_space<vmem>>, vector<32x16xf32>
    %cst_51 = arith.constant dense<0.000000e+00> : vector<8x16xf32>
    %73 = tpu.matmul %71, %72, %cst_51 {dimension_numbers = #tpu.dot_dimension_numbers<[1], [0], [0], [1], [0, 0, 1, 1], [], []>} : vector<8x32xf32>, vector<32x16xf32>, vector<8x16xf32> -> vector<8x16xf32>
    %cst_52 = arith.constant dense<0.000000e+00> : vector<16xf32>
    %74 = vector.multi_reduction <add>, %73, %cst_52 [0] : vector<8x16xf32> to vector<16xf32>
    %75 = vector.shape_cast %74 : vector<16xf32> to vector<1x16xf32>
    %cst_53 = arith.constant 8.000000e+00 : f32
    %76 = vector.broadcast %cst_53 : f32 to vector<1x16xf32>
    %77 = arith.divf %75, %76 : vector<1x16xf32>
    %78 = vector.broadcast %77 : vector<1x16xf32> to vector<8x16xf32>
    %79 = arith.subf %73, %78 : vector<8x16xf32>
    %80 = vector.broadcast %77 : vector<1x16xf32> to vector<8x16xf32>
    %81 = arith.subf %73, %80 : vector<8x16xf32>
    %82 = arith.mulf %79, %81 : vector<8x16xf32>
    %cst_54 = arith.constant dense<0.000000e+00> : vector<16xf32>
    %83 = vector.multi_reduction <add>, %82, %cst_54 [0] : vector<8x16xf32> to vector<16xf32>
    %84 = vector.shape_cast %83 : vector<16xf32> to vector<1x16xf32>
    %cst_55 = arith.constant 8.000000e+00 : f32
    %85 = vector.broadcast %cst_55 : f32 to vector<1x16xf32>
    %86 = arith.divf %84, %85 : vector<1x16xf32>
    %87 = vector.broadcast %77 : vector<1x16xf32> to vector<8x16xf32>
    %88 = arith.subf %73, %87 : vector<8x16xf32>
    %cst_56 = arith.constant 9.99999974E-6 : f32
    %89 = vector.broadcast %cst_56 : f32 to vector<1x16xf32>
    %90 = arith.addf %86, %89 : vector<1x16xf32>
    %91 = math.rsqrt %90 : vector<1x16xf32>
    %92 = vector.broadcast %91 : vector<1x16xf32> to vector<8x16xf32>
    %93 = arith.mulf %88, %92 : vector<8x16xf32>
    %c0_57 = arith.constant 0 : index
    %c0_58 = arith.constant 0 : index
    %94 = vector.load %arg17[%c0_57, %c0_58] : memref<1x16xf32, #tpu.memory_space<vmem>>, vector<1x16xf32>
    %95 = vector.broadcast %94 : vector<1x16xf32> to vector<8x16xf32>
    %96 = arith.mulf %93, %95 : vector<8x16xf32>
    %c0_59 = arith.constant 0 : index
    %c0_60 = arith.constant 0 : index
    %97 = vector.load %arg18[%c0_59, %c0_60] : memref<1x16xf32, #tpu.memory_space<vmem>>, vector<1x16xf32>
    %98 = vector.broadcast %97 : vector<1x16xf32> to vector<8x16xf32>
    %99 = arith.addf %96, %98 : vector<8x16xf32>
    %cst_61 = arith.constant 0.000000e+00 : f32
    %100 = vector.broadcast %cst_61 : f32 to vector<8x16xf32>
    %101 = arith.maximumf %99, %100 : vector<8x16xf32>
    %c0_62 = arith.constant 0 : index
    %c0_63 = arith.constant 0 : index
    %102 = vector.load %arg19[%c0_62, %c0_63] : memref<16x4xf32, #tpu.memory_space<vmem>>, vector<16x4xf32>
    %cst_64 = arith.constant dense<0.000000e+00> : vector<8x4xf32>
    %103 = tpu.matmul %101, %102, %cst_64 {dimension_numbers = #tpu.dot_dimension_numbers<[1], [0], [0], [1], [0, 0, 1, 1], [], []>} : vector<8x16xf32>, vector<16x4xf32>, vector<8x4xf32> -> vector<8x4xf32>
    %c0_65 = arith.constant 0 : index
    %c0_66 = arith.constant 0 : index
    %104 = vector.load %arg20[%c0_65, %c0_66] : memref<1x4xf32, #tpu.memory_space<vmem>>, vector<1x4xf32>
    %105 = vector.broadcast %104 : vector<1x4xf32> to vector<8x4xf32>
    %106 = arith.addf %103, %105 : vector<8x4xf32>
    %cst_67 = arith.constant dense<0xFF800000> : vector<8xf32>
    %107 = vector.multi_reduction <maximumf>, %106, %cst_67 [1] : vector<8x4xf32> to vector<8xf32>
    %108 = vector.shape_cast %107 : vector<8xf32> to vector<8x1xf32>
    %109 = vector.broadcast %108 : vector<8x1xf32> to vector<8x4xf32>
    %110 = arith.subf %106, %109 : vector<8x4xf32>
    %111 = math.exp %110 : vector<8x4xf32>
    %cst_68 = arith.constant dense<0.000000e+00> : vector<8xf32>
    %112 = vector.multi_reduction <add>, %111, %cst_68 [1] : vector<8x4xf32> to vector<8xf32>
    %113 = vector.shape_cast %112 : vector<8xf32> to vector<8x1xf32>
    %114 = tpu.reciprocal %113 {approx = true} : vector<8x1xf32> -> vector<8x1xf32>
    %115 = vector.broadcast %114 : vector<8x1xf32> to vector<8x4xf32>
    %116 = arith.mulf %111, %115 : vector<8x4xf32>
    %c0_69 = arith.constant 0 : index
    %c0_70 = arith.constant 0 : index
    %117 = vector.load %arg21[%c0_69, %c0_70] : memref<8x4xf32, #tpu.memory_space<vmem>>, vector<8x4xf32>
    tpu.vector_store %arg21[%c0_69, %c0_70], %116 {strides = array<i32>} : memref<8x4xf32, #tpu.memory_space<vmem>>, vector<8x4xf32>,
    return
  }
}

</mosaic_0001>

<bundles_post_ra>
// kernel: tpu_custom_call.1
= control target key start
LH: loop header
LB: loop body
LE: loop exit
PB: predicated region body
PF: predicated region fallthrough
CT: control target
= control target key end

     0   :  { %s1400_s0 = inlined_call_operand.vmem [shape: f32[8,16], index: 0, kind: input, shape index: {}]   ;;  %s1401_s1 = inlined_call_operand.vmem [shape: f32[16,16], index: 1, kind: input, shape index: {}]   ;;  %s1402_s2 = inlined_call_operand.vmem [shape: f32[16,8], index: 2, kind: input, shape index: {}]   ;;  %s1403_s3 = inlined_call_operand.vmem [shape: f32[16,1], index: 3, kind: input, shape index: {}]   ;;  %s1404_s4 = inlined_call_operand.vmem [shape: f32[16,16], index: 4, kind: input, shape index: {}]   ;;  %s1405_s5 = inlined_call_operand.vmem [shape: f32[16,1], index: 5, kind: input, shape index: {}]   ;;  %s1406_s6 = inlined_call_operand.vmem [shape: f32[8,16], index: 6, kind: input, shape index: {}]   ;;  %s1407_s7 = inlined_call_operand.vmem [shape: f32[8,1], index: 7, kind: input, shape index: {}]   ;;  %s1408_s8 = inlined_call_operand.vmem [shape: f32[4,8], index: 8, kind: input, shape index: {}]   ;;  %s1409_s9 = inlined_call_operand.vmem [shape: f32[4,1], index: 9, kind: input, shape index: {}]   ;;  %s1410_s10 = inlined_call_operand.vmem [shape: f32[4,1], index: 10, kind: input, shape index: {}]   ;;  %s1411_s11 = inlined_call_operand.<no memory space> [shape: f32[1,1], index: 11, kind: input, shape index: {}]   ;;  %s1412_s12 = inlined_call_operand.vmem [shape: f32[8,16], index: 12, kind: input, shape index: {}]   ;;  %s1413_s13 = inlined_call_operand.vmem [shape: f32[16,32], index: 13, kind: input, shape index: {}]   ;;  %s1414_s14 = inlined_call_operand.vmem [shape: f32[1,32], index: 14, kind: input, shape index: {}]   ;;  %s1415_s15 = inlined_call_operand.vmem [shape: f32[1,32], index: 15, kind: input, shape index: {}]   ;;  %s1416_s16 = inlined_call_operand.vmem [shape: f32[32,16], index: 16, kind: input, shape index: {}]   ;;  %s1417_s17 = inlined_call_operand.vmem [shape: f32[1,16], index: 17, kind: input, shape index: {}]   ;;  %s1418_s18 = inlined_call_operand.vmem [shape: f32[1,16], index: 18, kind: input, shape index: {}]   ;;  %s1419_s19 = inlined_call_operand.vmem [shape: f32[16,4], index: 19, kind: input, shape index: {}]   ;;  %s1420_s20 = inlined_call_operand.vmem [shape: f32[1,4], index: 20, kind: input, shape index: {}]   ;;  %s1421_s21 = inlined_call_operand.vmem [shape: f32[8,4], index: 21, kind: output, shape index: {0}]   ;;  %s1422_s22 = inlined_call_operand.hbm [shape: f32[8,16], index: 22, kind: output, shape index: {1}]  }
   0x1   :  { %1428 = sst [smem:[#allocation6_spill]] %s1400_s0  ;;  %v28_v0 = vstv %s1411_s11 }
   0x2   :  { %1429 = sst [smem:[#allocation7_spill]] %s1401_s1  ;;  %29 = vst [vmem:[#allocation2] sm:$0x1] %v28_v0 }
   0x3   :  { %1430 = sst [smem:[#allocation8_spill]] %s1402_s2 }
   0x4   :  { %1431 = sst [smem:[#allocation9_spill]] %s1403_s3 }
   0x5   :  { %1432 = sst [smem:[#allocation10_spill]] %s1404_s4 }
   0x6   :  { %1433 = sst [smem:[#allocation11_spill]] %s1405_s5 }
   0x7   :  { %1434 = sst [smem:[#allocation12_spill]] %s1406_s6 }
   0x8   :  { %s1435_s4 = sld [smem:[#allocation7_spill]]  ;;  %v1133_v3 = vmov 0.0|0.0   ;;  %vm1134_vm0 = vmmov 0   ;;  %v1135_v5 = vmov 0.0  }
   0x9   :  { %1068 = vmatprep.subr.bf16.mxu0 %v1133_v3  ;;  %1009 = vmatprep.mubr.msk.f32.mxu0 %vm1134_vm0, %v1135_v5 }
   0xe   :  { %v73_v1 = vld [vmem:[%s1435_s4] sm:$0xff]  ;;  %v74_v2 = vld [vmem:[%s1435_s4 + $0x8] sm:$0xff] }
   0xf   :  { %v1069_v4 = vpack.c.bf16 %v74_v2, %v73_v1 }
  0x10   :  { %30 = vsyncpa [#allocation4], 0  ;;  %s1436_s5 = sld [smem:[#allocation6_spill]]  ;;  %vm76_vm1 = vcmask 130048   ;;  %s1437_s25 = sld [smem:[#allocation8_spill]]  ;;  %vm164_vm2 = vcmask 64512   ;;  %v607_v57 = vlaneseq }
  0x11   :  { %1070 = vmatpush3.bf16.msra.mxu0 %v1069_v4  ;;  %s1438_s27 = sld [smem:[#allocation9_spill]]  ;;  %v1136_v9 = vmov 0   ;;  %v425_v11 = vld [vmem:[%s1407_s7] sm:$0xff]  ;;  %s1439_s1 = sld [smem:[#allocation10_spill]]  ;;  %v616_v48 = vld [vmem:[%s1413_s13 + $0x8] sm:$0xff]  ;;  %vm593_vm3 = vcmask 125952  }
  0x12   :  { %1099 = vset.pattern.permute.xlu0 %v1136_v9  ;;  %1100 = vset.pattern.permute.xlu1 %v1136_v9  ;;  %v586_v12 = vld [vmem:[%s1410_s10] sm:$0xf]  ;;  %s1440_s6 = sld [smem:[#allocation11_spill]]  ;;  %s1441_s30 = sld [smem:[#allocation12_spill]]  ;;  %v608_v60 = vshrl.u32 %v607_v57, 7  ;;  %vm690_vm4 = vcmask 261120  }
  0x13   :  { %v506_v27 = vld [vmem:[%s1409_s9] sm:$0xf]  ;;  %vm927_vm5 = vcmask 31744  }
  0x14   :  { %v601_v28 = vld [vmem:[#allocation2] sm:$0x1]  ;;  %v609_v63 = vsub.s32 0, %v608_v60 }
  0x15   :  { %v505_v46 = vld [vmem:[%s1408_s8] sm:$0xf] }
  0x16   :  { %v75_v6 = vld [vmem:[%s1436_s5] sm:$0xff]  ;;  %v151_v14 = vld [vmem:[%s1437_s25 + $0x8] sm:$0xff] }
  0x17   :  { %1010 = vmatmul.mubr.msk.f32.vlgmr.msra.gmra.mrb[0].mxu0 %vm76_vm1, %v75_v6  ;;  %v150_v7 = vld [vmem:[%s1437_s25] sm:$0xff]  ;;  %v153_v10 = vld [vmem:[%s1438_s27 + $0x8] sm:$0xff] }
  0x18   :  { %1014 = vmatprep.mubr.msk.f32.mxu1 %vm164_vm2, %v150_v7  ;;  %v152_v8 = vld [vmem:[%s1438_s27] sm:$0xff]  ;;  %v332_v26 = vld [vmem:[%s1440_s6 + $0x8] sm:$0xff] }
  0x19   :  { %156 = vperm.xlu0 %1099, %v152_v8   ;;  %v329_v24 = vld [vmem:[%s1439_s1] sm:$0xff]  ;;  %v330_v32 = vld [vmem:[%s1439_s1 + $0x8] sm:$0xff] }
  0x1a   :  { %1028 = vmatprep.mubr.msk.f32.mxu0 %vm76_vm1, %v329_v24  ;;  %v331_v25 = vld [vmem:[%s1440_s6] sm:$0xff] }
  0x1b   :  { %335 = vperm.xlu1 %1100, %v331_v25   ;;  %v424_v40 = vld [vmem:[%s1441_s30] sm:$0xff] }
  0x1c   :  { %v615_v47 = vld [vmem:[%s1413_s13] sm:$0xff] }
  0x1d   :  { %161 = vperm.xlu0 %1099, %v153_v10   ;;  %v1083_v49 = vpack.c.bf16 %v616_v48, %v615_v47  ;;  %v612_v7 = vld [vmem:[%s1412_s12] sm:$0xff] }
  0x1e   :  { %v730_v10 = vld [vmem:[%s1416_s16] sm:$0xff] }
  0x1f   :  { %340 = vperm.xlu1 %1100, %v332_v26  }
  0x21   :  { %428 = vperm.xlu0 %1099, %v425_v11   ;;  %v731_v11 = vld [vmem:[%s1416_s16 + $0x8] sm:$0xff] }
  0x23   :  { %509 = vperm.xlu1 %1100, %v506_v27  }
  0x25   :  { %589 = vperm.xlu0 %1099, %v586_v12   ;;  %v1086_v12 = vpack.c.bf16 %v731_v11, %v730_v10  ;;  %v973_v11 = vld [vmem:[%s1420_s20] ss:$0 sm:$0xff] }
  0x27   :  { %604 = vperm.xlu1 %1100, %v601_v28  }
  0x98   :  { %v157_v16 = vpop.permute.xlu0 %156 }
  0x9a   :  { %v336_v33 = vpop.permute.xlu1 %335 }
  0x9c   :  { %v162_v17 = vpop.permute.xlu0 %161 }
  0x9e   :  { %v341_v34 = vpop.permute.xlu1 %340 }
  0xa0   :  { %v429_v41 = vpop.permute.xlu0 %428 }
  0xa2   :  { %v510_v50 = vpop.permute.xlu1 %509 }
  0xa4   :  { %v590_v55 = vpop.permute.xlu0 %589 }
  0xa6   :  { %v605_v1 = vpop.permute.xlu1 %604 }
  0xea   :  { %v146_v13 = vpop.f32.mrb[0].mxu0 }
  0xeb   :  { %v1011_v15 = vpop.f32.mrb[1].mxu0  ;;  %1012 = vmatprep.subr.mxu1 %v146_v13 }
  0xec   :  { %1013 = vmatpush3.msra.mxu1 %v146_v13  ;;  %v732_v13 = vld [vmem:[%s1416_s16 + $0x10] sm:$0xff] }
  0xed   :  { %1015 = vmatmul.mubr.msk.f32.vlgmr.msra.gmra.mrb[0].mxu1 %vm164_vm2, %v151_v14  ;;  %1072 = vmatprep.subr.bf16.mxu1 %v1069_v4 }
  0xee   :  { %1074 = vmatpush3.bf16.msra.mxu1 %v1069_v4  ;;  %v610_v4 = vrot.slane %v605_v1, %v609_v63 }
  0xef   :  { %1079 = vmatprep.subr.bf16.mxu1 %v1133_v3 }
 0x1c0   :  { %v1016_v18 = vpop.f32.mrb[0].mxu1 }
 0x1c1   :  { %v243_v19 = vadd.f32 %v1016_v18, %v162_v17  ;;  %v237_v20 = vpop.f32.mrb[1].mxu1 }
 0x1c2   :  { %v238_v21 = vadd.f32 %v237_v20, %v157_v16 }
 0x1c3   :  { %v247_v23 = vmax.f32 %v243_v19, 0.0 }
 0x1c4   :  { %v246_v22 = vmax.f32 %v238_v21, 0.0 }
 0x1c6   :  { %1021 = vmatprep.mubr.msk.f32.mxu1 %vm76_vm1, %v246_v22 }
 0x1c7   :  { %1022 = vmatmul.mubr.msk.f32.vlgmr.msra.gmra.mrb[2].mxu1 %vm76_vm1, %v247_v23 }
 0x1c8   :  { %1035 = vmatprep.mubr.msk.f32.mxu1 %vm1134_vm0, %v1135_v5 }
 0x29a   :  { %v1023_v29 = vpop.f32.mrb[2].mxu1 }
 0x29b   :  { %v320_v30 = vpop.f32.mrb[3].mxu1 }
 0x29c   :  { %v1075_v31 = vpack.c.bf16 %v1023_v29, %v320_v30 }
 0x29e   :  { %1076 = vmatprep.subr.bf16.mxu0 %v1075_v31 }
 0x29f   :  { %1078 = vmatpush3.bf16.msra.mxu0 %v1075_v31 }
 0x2a0   :  { %1038 = vmatprep.subr.mxu0 %v1135_v5 }
 0x2a2   :  { %1029 = vmatmul.mubr.msk.f32.vlgmr.msra.gmra.mrb[2].mxu0 %vm76_vm1, %v330_v32 }
 0x2a3   :  { %1040 = vmatprep.mubr.msk.f32.mxu0 %vm1134_vm0, %v1135_v5 }
 0x375   :  { %v1030_v35 = vpop.f32.mrb[2].mxu0 }
 0x376   :  { %v421_v36 = vadd.f32 %v1030_v35, %v341_v34  ;;  %v415_v37 = vpop.f32.mrb[3].mxu0 }
 0x377   :  { %v416_v38 = vadd.f32 %v415_v37, %v336_v33 }
 0x379   :  { %v1080_v39 = vpack.c.bf16 %v421_v36, %v416_v38  ;;  %v968_v36 = vld [vmem:[%s1414_s14] ss:$0 sm:$0xff] }
 0x37a   :  { %v969_v38 = vld [vmem:[%s1415_s15] ss:$0 sm:$0xff] }
 0x37b   :  { %1081 = vmatpush3.bf16.msra.mxu1 %v1080_v39 }
 0x37c   :  { %1082 = vmatprep.subr.bf16.mxu1 %v1133_v3 }
 0x37e   :  { %1036 = vmatmul.mubr.msk.f32.vlgmr.msra.gmra.mrb[4].mxu1 %vm76_vm1, %v424_v40 }
 0x37f   :  { %1047 = vmatprep.mubr.msk.f32.mxu1 %vm1134_vm0, %v1135_v5  ;;  %1084 = vmatpush3.bf16.msra.mxu1 %v1083_v49 }
 0x380   :  { %1091 = vmatprep.subr.bf16.mxu1 %v1133_v3 }
 0x451   :  { %v500_v42 = vpop.f32.mrb[4].mxu1 }
 0x452   :  { %v501_v43 = vadd.f32 %v500_v42, %v429_v41  ;;  %v1037_v44 = vpop.f32.mrb[5].mxu1  ;;  %v845_v42 = vld [vmem:[%s1419_s19] sm:$0xff] }
 0x454   :  { %v504_v45 = vmax.f32 %v501_v43, 0.0  ;;  %v846_v43 = vld [vmem:[%s1419_s19 + $0x8] sm:$0xff] }
 0x455   :  { %v1092_v44 = vpack.c.bf16 %v846_v43, %v845_v42 }
 0x456   :  { %1039 = vmatpush3.msra.mxu0 %v504_v45 }
 0x457   :  { %1041 = vmatmul.mubr.msk.f32.vlgmr.msra.gmra.mrb[4].mxu0 %vm164_vm2, %v505_v46  ;;  %1085 = vmatprep.subr.bf16.mxu0 %v1133_v3 }
 0x458   :  { %1058 = vmatprep.mubr.msk.f32.mxu0 %vm1134_vm0, %v1135_v5  ;;  %1087 = vmatpush3.bf16.msra.mxu0 %v1086_v12 }
 0x459   :  { %1088 = vmatprep.subr.bf16.mxu0 %v1133_v3 }
 0x52a   :  { %v581_v51 = vpop.f32.mrb[4].mxu0 }
 0x52b   :  { %v582_v52 = vadd.f32 %v581_v51, %v510_v50  ;;  %v1042_v53 = vpop.f32.mrb[5].mxu0 }
 0x52d   :  { %v585_v54 = vmax.f32 %v582_v52, 0.0 }
 0x52f   :  { %v592_v56 = vmul.f32 %v590_v55, %v585_v54 }
 0x531   :  { %v594_v58 = vsel %vm593_vm3, %v592_v56, 0.0 }
 0x532   :  { %v595_v59 = vrot.slane %v594_v58, 4 }
 0x534   :  { %v596_v61 = vadd.f32 %v595_v59, %v594_v58 }
 0x536   :  { %v597_v62 = vrot.slane %v596_v61, 2 }
 0x538   :  { %v598_v0 = vadd.f32 %v597_v62, %v596_v61 }
 0x53a   :  { %v599_v2 = vrot.slane %v598_v0, 1 }
 0x53c   :  { %v600_v6 = vadd.f32 %v599_v2, %v598_v0 }
 0x53e   :  { %v611_v8 = vadd.f32 %v610_v4, %v600_v6  ;;  %v971_v4 = vld [vmem:[%s1417_s17] ss:$0 sm:$0xff]  ;;  %s1137_s17 = smov [#allocation3]  }
 0x540   :  { %v613_v9 = vmul.f32 %v612_v7, %v611_v8  ;;  %v972_v7 = vld [vmem:[%s1418_s18] ss:$0 sm:$0xff]  ;;  %s948_s18 = sshll.u32 %s1137_s17, 4  ;;  %s949_s18 = int_to_ptr.vmem [resolvable:$true] %s948_s18 }
 0x541   :  { %s1109_s7 = scalar_lea.vmem %s949_s18, 128  ;;  %p1114_p1 = scmp.lt.s32.totalorder %s949_s18, %s949_s18 }
 0x542   :  { %1048 = vmatmul.mubr.msk.f32.vlgmr.msra.gmra.mrb[6].mxu1 %vm76_vm1, %v613_v9  ;;  %614 = vst.msk [vmem:[#allocation3] sm:$0xff] %vm76_vm1, %v613_v9  ;;  %p1110_p0 = scmp.ne.s32.totalorder %s949_s18, %s1109_s7  ;;  %p1115_p2 = scmp.lt.s32.totalorder %s1109_s7, %s1109_s7 }
 0x543   :  { %1065 = vmatprep.mubr.msk.f32.mxu1 %vm1134_vm0, %v1135_v5  ;;  %v733_v5 = vld [vmem:[%s1416_s16 + $0x18] sm:$0xff]  ;;  %1093 = vmatpush3.bf16.msra.mxu1 %v1092_v44 }
 0x544   :  { %v1089_v14 = vpack.c.bf16 %v733_v5, %v732_v13  ;;  %p1116_p3 = por %p1115_p2, %p1114_p1 }
 0x546   :  { %1090 = vmatpush3.bf16.msra.mxu0 %v1089_v14  ;;  %p1117_p4 = pnand %p1116_p3, %p1110_p0 }
 0x615   :  { %v686_v15 = vpop.f32.mrb[6].mxu1 }
 0x616   :  { %v691_v16 = vsel %vm690_vm4, %v686_v15, 0.0  ;;  %v1049_v17 = vpop.f32.mrb[7].mxu1 }
 0x617   :  { %v692_v18 = vrot.slane %v691_v16, 4 }
 0x619   :  { %v693_v19 = vadd.f32 %v692_v18, %v691_v16 }
 0x61b   :  { %v694_v20 = vrot.slane %v693_v19, 2 }
 0x61d   :  { %v695_v21 = vadd.f32 %v694_v20, %v693_v19 }
 0x61f   :  { %v696_v3 = vrot.slane %v695_v21, 1 }
 0x621   :  { %v697_v22 = vadd.f32 %v696_v3, %v695_v21 }
 0x623   :  { %v699_v23 = vmul.f32 0.125, %v697_v22 }
 0x625   :  { %v700_v24 = vsub.f32 %v686_v15, %v699_v23 }
 0x627   :  { %v701_v25 = vmul.f32 %v700_v24, %v700_v24 }
 0x629   :  { %v702_v26 = vsel %vm690_vm4, %v701_v25, 0.0 }
 0x62a   :  { %v703_v27 = vrot.slane %v702_v26, 4 }
 0x62c   :  { %v704_v28 = vadd.f32 %v703_v27, %v702_v26 }
 0x62e   :  { %v705_v29 = vrot.slane %v704_v28, 2 }
 0x630   :  { %v706_v30 = vadd.f32 %v705_v29, %v704_v28 }
 0x632   :  { %v707_v31 = vrot.slane %v706_v30, 1 }
 0x634   :  { %v708_v32 = vadd.f32 %v707_v31, %v706_v30 }
 0x636   :  { %v709_v33 = vmul.f32 0.125, %v708_v32 }
 0x638   :  { %v710_v34 = vadd.f32 1e-05, %v709_v33 }
 0x63a   :  { %1101 = vrsqrt.f32 %v710_v34 }
 0x644   :  { %v1102_v35 = vpop.eup %1101 }
 0x645   :  { %v712_v37 = vmul.f32 %v1102_v35, %v700_v24 }
 0x647   :  { %v720_v39 = vmul.f32 %v968_v36, %v712_v37 }
 0x649   :  { %v728_v40 = vadd.f32 %v969_v38, %v720_v39 }
 0x64b   :  { %v729_v41 = vmax.f32 %v728_v40, 0.0 }
 0x64d   :  { %1059 = vmatmul.mubr.msk.f32.vlgmr.msra.gmra.mrb[6].mxu0 %vm690_vm4, %v729_v41 }
 0x720   :  { %v803_v45 = vpop.f32.mrb[6].mxu0 }
 0x721   :  { %v807_v46 = vsel %vm76_vm1, %v803_v45, 0.0  ;;  %v1060_v47 = vpop.f32.mrb[7].mxu0 }
 0x722   :  { %v808_v48 = vrot.slane %v807_v46, 4 }
 0x724   :  { %v809_v49 = vadd.f32 %v808_v48, %v807_v46 }
 0x726   :  { %v810_v50 = vrot.slane %v809_v49, 2 }
 0x728   :  { %v811_v51 = vadd.f32 %v810_v50, %v809_v49 }
 0x72a   :  { %v812_v52 = vrot.slane %v811_v51, 1 }
 0x72c   :  { %v813_v53 = vadd.f32 %v812_v52, %v811_v51 }
 0x72e   :  { %v814_v54 = vmul.f32 0.125, %v813_v53 }
 0x730   :  { %v815_v55 = vsub.f32 %v803_v45, %v814_v54 }
 0x732   :  { %v816_v56 = vmul.f32 %v815_v55, %v815_v55 }
 0x734   :  { %v817_v57 = vsel %vm76_vm1, %v816_v56, 0.0 }
 0x735   :  { %v818_v58 = vrot.slane %v817_v57, 4 }
 0x737   :  { %v819_v59 = vadd.f32 %v818_v58, %v817_v57 }
 0x739   :  { %v820_v60 = vrot.slane %v819_v59, 2 }
 0x73b   :  { %v821_v61 = vadd.f32 %v820_v60, %v819_v59 }
 0x73d   :  { %v822_v62 = vrot.slane %v821_v61, 1 }
 0x73f   :  { %v823_v63 = vadd.f32 %v822_v62, %v821_v61 }
 0x741   :  { %v824_v0 = vmul.f32 0.125, %v823_v63 }
 0x743   :  { %v825_v1 = vadd.f32 1e-05, %v824_v0 }
 0x745   :  { %1103 = vrsqrt.f32 %v825_v1 }
 0x74f   :  { %v1104_v2 = vpop.eup %1103 }
 0x750   :  { %v827_v6 = vmul.f32 %v1104_v2, %v815_v55 }
 0x752   :  { %v835_v8 = vmul.f32 %v971_v4, %v827_v6 }
 0x754   :  { %v843_v9 = vadd.f32 %v972_v7, %v835_v8 }
 0x756   :  { %v844_v10 = vmax.f32 %v843_v9, 0.0 }
 0x758   :  { %1066 = vmatmul.mubr.msk.f32.vlgmr.msra.gmra.mrb[8].mxu1 %vm76_vm1, %v844_v10 }
 0x82b   :  { %v923_v12 = vpop.f32.mrb[8].mxu1 }
 0x82c   :  { %v924_v13 = vadd.f32 %v973_v11, %v923_v12  ;;  %v1067_v5 = vpop.f32.mrb[9].mxu1 }
 0x82e   :  { %v928_v14 = vsel %vm927_vm5, %v924_v13, -inf }
 0x82f   :  { %929 = vmax.xlane.f32.xlu0 %v928_v14 }
 0x8bc   :  { %v930_v15 = vpop.xlane.xlu0 %929 }
 0x8bd   :  { %v931_v16 = vsub.f32 %v924_v13, %v930_v15 }
 0x8bf   :  { %v932_v17 = vmul.f32 1.442695, %v931_v16 }
 0x8c1   :  { %1105 = vpow2.f32 %v932_v17 }
 0x8cb   :  { %v1106_v18 = vpop.eup %1105 }
 0x8cc   :  { %v934_v19 = vsel %vm927_vm5, %v1106_v18, 0.0 }
 0x8cd   :  { %935 = vadd.xlane.f32.xlu1 %v934_v19 }
 0x8ce   :  { %1120 = shalt.err (!%p1117_p4)
}
 0x8cf   :  { %s1121_s8 = scalar_lea.hbm %s1422_s22, 128 }
 0x8d0   :  { %p1122_p5 = scmp.ne.s32.totalorder %s1422_s22, %s1121_s8  ;;  %p1125_p6 = scmp.lt.u32.totalorder %s1121_s8, %s1422_s22 }
 0x8d2   :  { %p1127_p7 = pnand %p1125_p6, %p1122_p5 }
 0x8d4   :  { %1130 = shalt.err (!%p1127_p7)
}
 0x8d5   :  { %951 = dma.vmem_to_hbm [thread:$0]  %s949_s18, 128, %s1422_s22, [#allocation4]  }
 0x95a   :  { %v936_v20 = vpop.xlane.xlu1 %935 }
 0x95b   :  { %1107 = vrcp.f32 %v936_v20 }
 0x965   :  { %v1108_v21 = vpop.eup %1107 }
 0x966   :  { %v938_v3 = vmul.f32 %v1108_v21, %v1106_v18 }
 0x968   :  { %939 = vst.msk [vmem:[%s1421_s21] sm:$0xff] %vm927_vm5, %v938_v3 }
 0x969   :  { %1131 = dma.done.wait [#allocation4], 128  }
 0x96a   :  { %1132 = vsyncadd [#allocation4], 4294967168 }
 0x96b   :  { %957 = vsyncpa [#allocation4], 1 }

</bundles_post_ra>
